<compile_context>
chip_gen: v5e
topology: v5e:2x2
jax: 0.10.0
libtpu: 0.0.40
codegen_flags: <defaults>
</compile_context>

<pallas_src>
import numpy as np
import jax
import jax.numpy as jnp
from jax.experimental import pallas as pl
from jax.experimental.pallas import tpu as pltpu

_NEG = -1e9                    # padding sentinel for extra tag rows/cols (exp() -> 0)
_FEATS_DTYPE = jnp.float32     # set to jnp.bfloat16 on v5e to halve the feats HBM stream


def _crf_forward_kernel(maxchunk_ref,   # SMEM (nb,) int32   last needed chunk per batch tile
                        feats_ref,      # VMEM (TS, TB, Tp)  emissions, one time chunk
                        masks_ref,      # VMEM (TS, TB, 1)   float 0/1 mask, one time chunk
                        etrans_ref,     # VMEM (Tp, Tp)      exp(trans.T - rowmax) (resident)
                        rowmax_ref,     # VMEM (1, Tp)       max_prev trans[cur, prev] (resident)
                        out_ref):       # VMEM (TB, Tp)      resident alpha accumulator
    b = pl.program_id(0)
    c = pl.program_id(1)
    ts = feats_ref.shape[0]

    def step(t, alpha):
        emit = feats_ref[t].astype(jnp.float32)                 # (TB, Tp)
        mask = masks_ref[t]                                     # (TB, 1)
        m = jnp.max(alpha, axis=-1, keepdims=True)              # (TB, 1)
        ealpha = jnp.exp(alpha - m)                             # (TB, Tp)
        # ssum[b,cur] = sum_prev exp(alpha[b,prev]-m[b]) * exp(trans[cur,prev]-rowmax[cur])
        ssum = jnp.dot(ealpha, etrans_ref[...],
                       preferred_element_type=jnp.float32)      # MXU, (TB, Tp)
        lse = (emit + m + rowmax_ref[...]
               + jnp.log(jnp.maximum(ssum, 1e-37)))             # clamp: never log(0)
        return jnp.where(mask > 0.0, lse, alpha)                # masked step: carry alpha

    @pl.when(c == 0)
    def _first_chunk():
        # alpha_0 = feats[:, 0] (step 0 assumed valid, as in the reference),
        # then run steps 1..TS-1 of this chunk.
        alpha0 = feats_ref[0].astype(jnp.float32)
        out_ref[...] = jax.lax.fori_loop(1, ts, step, alpha0, unroll=True)

    @pl.when(jnp.logical_and(c > 0, c <= maxchunk_ref[b]))
    def _chunk():
        # Chunks past maxchunk[b] are skipped entirely (their DMAs were also
        # skipped via the clamped index_map).
        out_ref[...] = jax.lax.fori_loop(0, ts, step, out_ref[...], unroll=True)


def _pick_batch_tile(bp):
    # Cap at bp//2 once bp >= 16 so the "parallel" batch axis always has >= 2
    # tiles (keeps v7x's second TensorCore busy; harmless on v5e/v6e).
    cap = bp // 2 if bp >= 16 else bp
    for tb in (256, 128, 64, 32, 16, 8):
        if tb <= cap and bp % tb == 0:
            return tb
    return bp


def _pick_time_chunk(s, tb, tp, itemsize):
    # Power-of-two chunk of <= 16 timesteps; shrink until the double-buffered
    # feats window stays well inside scoped VMEM (v7x physical VMEM is 64 MiB).
    ts = 16
    while ts > max(s, 1):
        ts //= 2
    ts = max(ts, 1)
    while ts > 1 and 2 * ts * tb * tp * itemsize > (8 << 20):
        ts //= 2
    return ts


@jax.jit
def crf_forward(feats, masks, transitions):
    """feats: (B, S, T) f32, masks: (B, S) {0,1}, transitions: (T, T) f32 -> (B, T)."""
    B, S, T = feats.shape
    feats = feats.astype(jnp.float32)
    masks = masks.astype(jnp.float32)
    transitions = transitions.astype(jnp.float32)

    # Tag dim: lane/MXU aligned.  256-multiples only when T > 128 (v6e/v7x MXU
    # width); 128 is already native for small tag sets and for v5e.
    if T > 128:
        Tp = ((T + 255) // 256) * 256
    else:
        Tp = 128
    Bp = ((B + 7) // 8) * 8                     # sublane-aligned batch
    TB = _pick_batch_tile(Bp)                   # batch tile ("parallel" grid axis)
    nb = Bp // TB
    fbytes = jnp.dtype(_FEATS_DTYPE).itemsize
    TS = _pick_time_chunk(S, TB, Tp, fbytes)    # timesteps per grid step
    Sp = ((S + TS - 1) // TS) * TS
    nc = Sp // TS

    # TODO(synk): in production, emit feats time-major & tag-padded straight out of
    # the emission projection so this standalone transpose/pad disappears entirely.
    feats_p = jnp.pad(jnp.transpose(feats, (1, 0, 2)),
                      ((0, Sp - S), (0, Bp - B), (0, Tp - T)),
                      constant_values=_NEG).astype(_FEATS_DTYPE)       # (Sp, Bp, Tp)
    masks_p = jnp.pad(jnp.transpose(masks, (1, 0))[:, :, None],
                      ((0, Sp - S), (0, Bp - B), (0, 0)))              # (Sp, Bp, 1)

    # Transition preprocessing hoisted out of the kernel (no per-tile exp/max).
    trans_p = jnp.pad(transitions, ((0, Tp - T), (0, Tp - T)),
                      constant_values=_NEG)
    transT_p = trans_p.T                                                # (prev, cur)
    rowmax = jnp.max(transT_p, axis=0, keepdims=True)                  # (1, Tp)
    etrans = jnp.exp(transT_p - rowmax)                                # (Tp, Tp)

    # Per-batch-tile last chunk containing any valid step (scalar-prefetched):
    # clamps the feats/masks index_maps so trailing padded chunks skip their DMAs.
    idx = jnp.arange(S, dtype=jnp.int32)
    lengths = jnp.max(jnp.where(masks > 0, idx[None, :], 0),
                      axis=1).astype(jnp.int32) + 1                    # (B,)
    if Bp > B:
        lengths = jnp.concatenate([lengths, jnp.ones((Bp - B,), jnp.int32)])
    maxlen = jnp.max(lengths.reshape(nb, TB), axis=1)                  # (nb,)
    maxchunk = (maxlen - 1) // TS                                      # (nb,) >= 0

    # VMEM budget: double-buffered feats/masks + resident etrans/rowmax/alpha.
    vmem_bytes = (2 * TS * TB * Tp * fbytes        # feats window
                  + 2 * TS * TB * 128 * 4          # masks window (lane-padded)
                  + 2 * Tp * Tp * 4                # etrans
                  + 2 * 8 * Tp * 4                 # rowmax (sublane-padded)
                  + 2 * TB * Tp * 4)               # resident alpha
    vmem_limit = int(min(48 << 20, max(24 << 20, 2 * vmem_bytes + (2 << 20))))

    grid_spec = pltpu.PrefetchScalarGridSpec(
        num_scalar_prefetch=1,
        grid=(nb, nc),
        in_specs=[
            # Clamp chunk index: padded trailing chunks repeat the previous
            # block -> Pallas skips the DMA.
            pl.BlockSpec((TS, TB, Tp), lambda b, c, mc: (jnp.minimum(c, mc[b]), b, 0)),
            pl.BlockSpec((TS, TB, 1), lambda b, c, mc: (jnp.minimum(c, mc[b]), b, 0)),
            pl.BlockSpec((Tp, Tp), lambda b, c, mc: (0, 0)),   # etrans (resident)
            pl.BlockSpec((1, Tp), lambda b, c, mc: (0, 0)),    # rowmax (resident)
        ],
        out_specs=pl.BlockSpec((TB, Tp), lambda b, c, mc: (b, 0)),   # alpha accumulator
    )

    alpha_p = pl.pallas_call(
        _crf_forward_kernel,
        out_shape=jax.ShapeDtypeStruct((Bp, Tp), jnp.float32),
        grid_spec=grid_spec,
        compiler_params=pltpu.CompilerParams(
            dimension_semantics=("parallel", "arbitrary"),
            vmem_limit_bytes=vmem_limit),
    )(maxchunk, feats_p, masks_p, etrans, rowmax)

    return alpha_p[:B, :T]


def crf_forward_ref(feats, masks, transitions):
    """Pure-JAX mirror of the PyTorch _forward_alg for validation."""
    B, S, T = feats.shape
    alpha = feats[:, 0]
    for i in range(1, S):
        emit = feats[:, i][:, :, None]
        scores = alpha[:, None, :] + transitions[None, :, :] + emit
        new_alpha = jax.scipy.special.logsumexp(scores, axis=2)
        mask = masks[:, i][:, None]
        alpha = new_alpha * mask + alpha * (1.0 - mask)
    return alpha


if __name__ == "__main__":
    batch, seq_len, tagset_size = 2, 8, 8
    hidden_dim = 32  # unused by CRF.forward (kept for interface parity)

    key = jax.random.PRNGKey(0)
    k_trans, k_feats = jax.random.split(key)

    # Parameter init mirroring CRF.__init__: randn, then row 0 / col 0 = -1e4.
    transitions = jax.random.normal(k_trans, (tagset_size, tagset_size),
                                    dtype=jnp.float32)
    transitions = transitions.at[:, 0].set(-10000.0)
    transitions = transitions.at[0, :].set(-10000.0)

    feats = jax.random.normal(k_feats, (batch, seq_len, tagset_size),
                              dtype=jnp.float32)
    # Masks: first sequence fully valid, second sequence valid for 5 steps.
    masks = jnp.array(
        [[1.0] * seq_len,
         [1.0] * 5 + [0.0] * (seq_len - 5)],
        dtype=jnp.float32)

    out = jax.block_until_ready(crf_forward(feats, masks, transitions))
    ref = crf_forward_ref(feats, masks, transitions)

    assert out.shape == (batch, tagset_size)
    np.testing.assert_allclose(np.asarray(out), np.asarray(ref),
                               rtol=1e-5, atol=1e-4)
    print("KERNEL_OK")
</pallas_src>

<mosaic_0001>
module attributes {stable_mosaic.version = 11 : i64} {
  func.func @_crf_forward_kernel(%arg0: i32, %arg1: i32, %arg2: memref<1xi32, #tpu.memory_space<smem>>, %arg3: memref<8x8x128xf32, #tpu.memory_space<vmem>>, %arg4: memref<8x8x1xf32, #tpu.memory_space<vmem>>, %arg5: memref<128x128xf32, #tpu.memory_space<vmem>>, %arg6: memref<1x128xf32, #tpu.memory_space<vmem>>, %arg7: memref<8x128xf32, #tpu.memory_space<vmem>>) attributes {dimension_semantics = [#tpu.dimension_semantics<parallel>, #tpu.dimension_semantics<arbitrary>], iteration_bounds = array<i64: 1, 1>, scalar_prefetch = 1 : i64, scratch_operands = 0 : i64, tpu.core_type = #tpu.core_type<tc>, window_params = [{transform_indices = @transform_0, window_bounds = array<i64: 8, 8, 128>}, {transform_indices = @transform_1, window_bounds = array<i64: 8, 8, 1>}, {pipeline_mode = #tpu.pipeline_mode<synchronous>, transform_indices = @transform_2, window_bounds = array<i64: 128, 128>}, {pipeline_mode = #tpu.pipeline_mode<synchronous>, transform_indices = @transform_3, window_bounds = array<i64: 1, 128>}, {transform_indices = @transform_4, window_bounds = array<i64: 8, 128>}]} {
    %c0_i32 = arith.constant 0 : i32
    %0 = arith.cmpi eq, %arg1, %c0_i32 : i32
    %1 = arith.extui %0 : i1 to i32
    %c0_i32_0 = arith.constant 0 : i32
    %2 = arith.cmpi ne, %1, %c0_i32_0 : i32
    scf.if %2 {
      %c0 = arith.constant 0 : index
      %c0_3 = arith.constant 0 : index
      %c0_4 = arith.constant 0 : index
      %10 = vector.load %arg3[%c0, %c0_3, %c0_4] : memref<8x8x128xf32, #tpu.memory_space<vmem>>, vector<1x8x128xf32>
      %11 = vector.shape_cast %10 : vector<1x8x128xf32> to vector<8x128xf32>
      %c1_i32 = arith.constant 1 : i32
      %12 = arith.index_cast %c1_i32 : i32 to index
      %c0_5 = arith.constant 0 : index
      %c0_6 = arith.constant 0 : index
      %13 = vector.load %arg3[%12, %c0_5, %c0_6] : memref<8x8x128xf32, #tpu.memory_space<vmem>>, vector<1x8x128xf32>
      %14 = vector.shape_cast %13 : vector<1x8x128xf32> to vector<8x128xf32>
      %15 = arith.index_cast %c1_i32 : i32 to index
      %c0_7 = arith.constant 0 : index
      %c0_8 = arith.constant 0 : index
      %16 = vector.load %arg4[%15, %c0_7, %c0_8] : memref<8x8x1xf32, #tpu.memory_space<vmem>>, vector<1x8x1xf32>
      %17 = vector.shape_cast %16 : vector<1x8x1xf32> to vector<8x1xf32>
      %cst = arith.constant dense<0xFF800000> : vector<8xf32>
      %18 = vector.multi_reduction <maximumf>, %11, %cst [1] : vector<8x128xf32> to vector<8xf32>
      %19 = vector.shape_cast %18 : vector<8xf32> to vector<8x1xf32>
      %20 = vector.broadcast %19 : vector<8x1xf32> to vector<8x128xf32>
      %21 = arith.subf %11, %20 : vector<8x128xf32>
      %22 = math.exp %21 : vector<8x128xf32>
      %c0_9 = arith.constant 0 : index
      %c0_10 = arith.constant 0 : index
      %23 = vector.load %arg5[%c0_9, %c0_10] : memref<128x128xf32, #tpu.memory_space<vmem>>, vector<128x128xf32>
      %cst_11 = arith.constant dense<0.000000e+00> : vector<8x128xf32>
      %24 = tpu.matmul %22, %23, %cst_11 {dimension_numbers = #tpu.dot_dimension_numbers<[1], [0], [0], [1], [0, 0, 1, 1], [], []>} : vector<8x128xf32>, vector<128x128xf32>, vector<8x128xf32> -> vector<8x128xf32>
      %25 = vector.broadcast %19 : vector<8x1xf32> to vector<8x128xf32>
      %26 = arith.addf %14, %25 : vector<8x128xf32>
      %c0_12 = arith.constant 0 : index
      %c0_13 = arith.constant 0 : index
      %27 = vector.load %arg6[%c0_12, %c0_13] : memref<1x128xf32, #tpu.memory_space<vmem>>, vector<1x128xf32>
      %28 = vector.broadcast %27 : vector<1x128xf32> to vector<8x128xf32>
      %29 = arith.addf %26, %28 : vector<8x128xf32>
      %cst_14 = arith.constant 9.99999991E-38 : f32
      %30 = vector.broadcast %cst_14 : f32 to vector<8x128xf32>
      %31 = arith.maximumf %24, %30 : vector<8x128xf32>
      %32 = math.log %31 : vector<8x128xf32>
      %33 = arith.addf %29, %32 : vector<8x128xf32>
      %cst_15 = arith.constant 0.000000e+00 : f32
      %34 = vector.broadcast %cst_15 : f32 to vector<8x1xf32>
      %35 = arith.cmpf ogt, %17, %34 : vector<8x1xf32>
      %36 = vector.shape_cast %35 : vector<8x1xi1> to vector<8x1xi1>
      %37 = vector.broadcast %36 : vector<8x1xi1> to vector<8x128xi1>
      %38 = arith.select %37, %33, %11 : vector<8x128xi1>, vector<8x128xf32>
      %c2_i32 = arith.constant 2 : i32
      %39 = arith.index_cast %c2_i32 : i32 to index
      %c0_16 = arith.constant 0 : index
      %c0_17 = arith.constant 0 : index
      %40 = vector.load %arg3[%39, %c0_16, %c0_17] : memref<8x8x128xf32, #tpu.memory_space<vmem>>, vector<1x8x128xf32>
      %41 = vector.shape_cast %40 : vector<1x8x128xf32> to vector<8x128xf32>
      %42 = arith.index_cast %c2_i32 : i32 to index
      %c0_18 = arith.constant 0 : index
      %c0_19 = arith.constant 0 : index
      %43 = vector.load %arg4[%42, %c0_18, %c0_19] : memref<8x8x1xf32, #tpu.memory_space<vmem>>, vector<1x8x1xf32>
      %44 = vector.shape_cast %43 : vector<1x8x1xf32> to vector<8x1xf32>
      %cst_20 = arith.constant dense<0xFF800000> : vector<8xf32>
      %45 = vector.multi_reduction <maximumf>, %38, %cst_20 [1] : vector<8x128xf32> to vector<8xf32>
      %46 = vector.shape_cast %45 : vector<8xf32> to vector<8x1xf32>
      %47 = vector.broadcast %46 : vector<8x1xf32> to vector<8x128xf32>
      %48 = arith.subf %38, %47 : vector<8x128xf32>
      %49 = math.exp %48 : vector<8x128xf32>
      %c0_21 = arith.constant 0 : index
      %c0_22 = arith.constant 0 : index
      %50 = vector.load %arg5[%c0_21, %c0_22] : memref<128x128xf32, #tpu.memory_space<vmem>>, vector<128x128xf32>
      %cst_23 = arith.constant dense<0.000000e+00> : vector<8x128xf32>
      %51 = tpu.matmul %49, %50, %cst_23 {dimension_numbers = #tpu.dot_dimension_numbers<[1], [0], [0], [1], [0, 0, 1, 1], [], []>} : vector<8x128xf32>, vector<128x128xf32>, vector<8x128xf32> -> vector<8x128xf32>
      %52 = vector.broadcast %46 : vector<8x1xf32> to vector<8x128xf32>
      %53 = arith.addf %41, %52 : vector<8x128xf32>
      %c0_24 = arith.constant 0 : index
      %c0_25 = arith.constant 0 : index
      %54 = vector.load %arg6[%c0_24, %c0_25] : memref<1x128xf32, #tpu.memory_space<vmem>>, vector<1x128xf32>
      %55 = vector.broadcast %54 : vector<1x128xf32> to vector<8x128xf32>
      %56 = arith.addf %53, %55 : vector<8x128xf32>
      %cst_26 = arith.constant 9.99999991E-38 : f32
      %57 = vector.broadcast %cst_26 : f32 to vector<8x128xf32>
      %58 = arith.maximumf %51, %57 : vector<8x128xf32>
      %59 = math.log %58 : vector<8x128xf32>
      %60 = arith.addf %56, %59 : vector<8x128xf32>
      %cst_27 = arith.constant 0.000000e+00 : f32
      %61 = vector.broadcast %cst_27 : f32 to vector<8x1xf32>
      %62 = arith.cmpf ogt, %44, %61 : vector<8x1xf32>
      %63 = vector.shape_cast %62 : vector<8x1xi1> to vector<8x1xi1>
      %64 = vector.broadcast %63 : vector<8x1xi1> to vector<8x128xi1>
      %65 = arith.select %64, %60, %38 : vector<8x128xi1>, vector<8x128xf32>
      %c3_i32 = arith.constant 3 : i32
      %66 = arith.index_cast %c3_i32 : i32 to index
      %c0_28 = arith.constant 0 : index
      %c0_29 = arith.constant 0 : index
      %67 = vector.load %arg3[%66, %c0_28, %c0_29] : memref<8x8x128xf32, #tpu.memory_space<vmem>>, vector<1x8x128xf32>
      %68 = vector.shape_cast %67 : vector<1x8x128xf32> to vector<8x128xf32>
      %69 = arith.index_cast %c3_i32 : i32 to index
      %c0_30 = arith.constant 0 : index
      %c0_31 = arith.constant 0 : index
      %70 = vector.load %arg4[%69, %c0_30, %c0_31] : memref<8x8x1xf32, #tpu.memory_space<vmem>>, vector<1x8x1xf32>
      %71 = vector.shape_cast %70 : vector<1x8x1xf32> to vector<8x1xf32>
      %cst_32 = arith.constant dense<0xFF800000> : vector<8xf32>
      %72 = vector.multi_reduction <maximumf>, %65, %cst_32 [1] : vector<8x128xf32> to vector<8xf32>
      %73 = vector.shape_cast %72 : vector<8xf32> to vector<8x1xf32>
      %74 = vector.broadcast %73 : vector<8x1xf32> to vector<8x128xf32>
      %75 = arith.subf %65, %74 : vector<8x128xf32>
      %76 = math.exp %75 : vector<8x128xf32>
      %c0_33 = arith.constant 0 : index
      %c0_34 = arith.constant 0 : index
      %77 = vector.load %arg5[%c0_33, %c0_34] : memref<128x128xf32, #tpu.memory_space<vmem>>, vector<128x128xf32>
      %cst_35 = arith.constant dense<0.000000e+00> : vector<8x128xf32>
      %78 = tpu.matmul %76, %77, %cst_35 {dimension_numbers = #tpu.dot_dimension_numbers<[1], [0], [0], [1], [0, 0, 1, 1], [], []>} : vector<8x128xf32>, vector<128x128xf32>, vector<8x128xf32> -> vector<8x128xf32>
      %79 = vector.broadcast %73 : vector<8x1xf32> to vector<8x128xf32>
      %80 = arith.addf %68, %79 : vector<8x128xf32>
      %c0_36 = arith.constant 0 : index
      %c0_37 = arith.constant 0 : index
      %81 = vector.load %arg6[%c0_36, %c0_37] : memref<1x128xf32, #tpu.memory_space<vmem>>, vector<1x128xf32>
      %82 = vector.broadcast %81 : vector<1x128xf32> to vector<8x128xf32>
      %83 = arith.addf %80, %82 : vector<8x128xf32>
      %cst_38 = arith.constant 9.99999991E-38 : f32
      %84 = vector.broadcast %cst_38 : f32 to vector<8x128xf32>
      %85 = arith.maximumf %78, %84 : vector<8x128xf32>
      %86 = math.log %85 : vector<8x128xf32>
      %87 = arith.addf %83, %86 : vector<8x128xf32>
      %cst_39 = arith.constant 0.000000e+00 : f32
      %88 = vector.broadcast %cst_39 : f32 to vector<8x1xf32>
      %89 = arith.cmpf ogt, %71, %88 : vector<8x1xf32>
      %90 = vector.shape_cast %89 : vector<8x1xi1> to vector<8x1xi1>
      %91 = vector.broadcast %90 : vector<8x1xi1> to vector<8x128xi1>
      %92 = arith.select %91, %87, %65 : vector<8x128xi1>, vector<8x128xf32>
      %c4_i32 = arith.constant 4 : i32
      %93 = arith.index_cast %c4_i32 : i32 to index
      %c0_40 = arith.constant 0 : index
      %c0_41 = arith.constant 0 : index
      %94 = vector.load %arg3[%93, %c0_40, %c0_41] : memref<8x8x128xf32, #tpu.memory_space<vmem>>, vector<1x8x128xf32>
      %95 = vector.shape_cast %94 : vector<1x8x128xf32> to vector<8x128xf32>
      %96 = arith.index_cast %c4_i32 : i32 to index
      %c0_42 = arith.constant 0 : index
      %c0_43 = arith.constant 0 : index
      %97 = vector.load %arg4[%96, %c0_42, %c0_43] : memref<8x8x1xf32, #tpu.memory_space<vmem>>, vector<1x8x1xf32>
      %98 = vector.shape_cast %97 : vector<1x8x1xf32> to vector<8x1xf32>
      %cst_44 = arith.constant dense<0xFF800000> : vector<8xf32>
      %99 = vector.multi_reduction <maximumf>, %92, %cst_44 [1] : vector<8x128xf32> to vector<8xf32>
      %100 = vector.shape_cast %99 : vector<8xf32> to vector<8x1xf32>
      %101 = vector.broadcast %100 : vector<8x1xf32> to vector<8x128xf32>
      %102 = arith.subf %92, %101 : vector<8x128xf32>
      %103 = math.exp %102 : vector<8x128xf32>
      %c0_45 = arith.constant 0 : index
      %c0_46 = arith.constant 0 : index
      %104 = vector.load %arg5[%c0_45, %c0_46] : memref<128x128xf32, #tpu.memory_space<vmem>>, vector<128x128xf32>
      %cst_47 = arith.constant dense<0.000000e+00> : vector<8x128xf32>
      %105 = tpu.matmul %103, %104, %cst_47 {dimension_numbers = #tpu.dot_dimension_numbers<[1], [0], [0], [1], [0, 0, 1, 1], [], []>} : vector<8x128xf32>, vector<128x128xf32>, vector<8x128xf32> -> vector<8x128xf32>
      %106 = vector.broadcast %100 : vector<8x1xf32> to vector<8x128xf32>
      %107 = arith.addf %95, %106 : vector<8x128xf32>
      %c0_48 = arith.constant 0 : index
      %c0_49 = arith.constant 0 : index
      %108 = vector.load %arg6[%c0_48, %c0_49] : memref<1x128xf32, #tpu.memory_space<vmem>>, vector<1x128xf32>
      %109 = vector.broadcast %108 : vector<1x128xf32> to vector<8x128xf32>
      %110 = arith.addf %107, %109 : vector<8x128xf32>
      %cst_50 = arith.constant 9.99999991E-38 : f32
      %111 = vector.broadcast %cst_50 : f32 to vector<8x128xf32>
      %112 = arith.maximumf %105, %111 : vector<8x128xf32>
      %113 = math.log %112 : vector<8x128xf32>
      %114 = arith.addf %110, %113 : vector<8x128xf32>
      %cst_51 = arith.constant 0.000000e+00 : f32
      %115 = vector.broadcast %cst_51 : f32 to vector<8x1xf32>
      %116 = arith.cmpf ogt, %98, %115 : vector<8x1xf32>
      %117 = vector.shape_cast %116 : vector<8x1xi1> to vector<8x1xi1>
      %118 = vector.broadcast %117 : vector<8x1xi1> to vector<8x128xi1>
      %119 = arith.select %118, %114, %92 : vector<8x128xi1>, vector<8x128xf32>
      %c5_i32 = arith.constant 5 : i32
      %120 = arith.index_cast %c5_i32 : i32 to index
      %c0_52 = arith.constant 0 : index
      %c0_53 = arith.constant 0 : index
      %121 = vector.load %arg3[%120, %c0_52, %c0_53] : memref<8x8x128xf32, #tpu.memory_space<vmem>>, vector<1x8x128xf32>
      %122 = vector.shape_cast %121 : vector<1x8x128xf32> to vector<8x128xf32>
      %123 = arith.index_cast %c5_i32 : i32 to index
      %c0_54 = arith.constant 0 : index
      %c0_55 = arith.constant 0 : index
      %124 = vector.load %arg4[%123, %c0_54, %c0_55] : memref<8x8x1xf32, #tpu.memory_space<vmem>>, vector<1x8x1xf32>
      %125 = vector.shape_cast %124 : vector<1x8x1xf32> to vector<8x1xf32>
      %cst_56 = arith.constant dense<0xFF800000> : vector<8xf32>
      %126 = vector.multi_reduction <maximumf>, %119, %cst_56 [1] : vector<8x128xf32> to vector<8xf32>
      %127 = vector.shape_cast %126 : vector<8xf32> to vector<8x1xf32>
      %128 = vector.broadcast %127 : vector<8x1xf32> to vector<8x128xf32>
      %129 = arith.subf %119, %128 : vector<8x128xf32>
      %130 = math.exp %129 : vector<8x128xf32>
      %c0_57 = arith.constant 0 : index
      %c0_58 = arith.constant 0 : index
      %131 = vector.load %arg5[%c0_57, %c0_58] : memref<128x128xf32, #tpu.memory_space<vmem>>, vector<128x128xf32>
      %cst_59 = arith.constant dense<0.000000e+00> : vector<8x128xf32>
      %132 = tpu.matmul %130, %131, %cst_59 {dimension_numbers = #tpu.dot_dimension_numbers<[1], [0], [0], [1], [0, 0, 1, 1], [], []>} : vector<8x128xf32>, vector<128x128xf32>, vector<8x128xf32> -> vector<8x128xf32>
      %133 = vector.broadcast %127 : vector<8x1xf32> to vector<8x128xf32>
      %134 = arith.addf %122, %133 : vector<8x128xf32>
      %c0_60 = arith.constant 0 : index
      %c0_61 = arith.constant 0 : index
      %135 = vector.load %arg6[%c0_60, %c0_61] : memref<1x128xf32, #tpu.memory_space<vmem>>, vector<1x128xf32>
      %136 = vector.broadcast %135 : vector<1x128xf32> to vector<8x128xf32>
      %137 = arith.addf %134, %136 : vector<8x128xf32>
      %cst_62 = arith.constant 9.99999991E-38 : f32
      %138 = vector.broadcast %cst_62 : f32 to vector<8x128xf32>
      %139 = arith.maximumf %132, %138 : vector<8x128xf32>
      %140 = math.log %139 : vector<8x128xf32>
      %141 = arith.addf %137, %140 : vector<8x128xf32>
      %cst_63 = arith.constant 0.000000e+00 : f32
      %142 = vector.broadcast %cst_63 : f32 to vector<8x1xf32>
      %143 = arith.cmpf ogt, %125, %142 : vector<8x1xf32>
      %144 = vector.shape_cast %143 : vector<8x1xi1> to vector<8x1xi1>
      %145 = vector.broadcast %144 : vector<8x1xi1> to vector<8x128xi1>
      %146 = arith.select %145, %141, %119 : vector<8x128xi1>, vector<8x128xf32>
      %c6_i32 = arith.constant 6 : i32
      %147 = arith.index_cast %c6_i32 : i32 to index
      %c0_64 = arith.constant 0 : index
      %c0_65 = arith.constant 0 : index
      %148 = vector.load %arg3[%147, %c0_64, %c0_65] : memref<8x8x128xf32, #tpu.memory_space<vmem>>, vector<1x8x128xf32>
      %149 = vector.shape_cast %148 : vector<1x8x128xf32> to vector<8x128xf32>
      %150 = arith.index_cast %c6_i32 : i32 to index
      %c0_66 = arith.constant 0 : index
      %c0_67 = arith.constant 0 : index
      %151 = vector.load %arg4[%150, %c0_66, %c0_67] : memref<8x8x1xf32, #tpu.memory_space<vmem>>, vector<1x8x1xf32>
      %152 = vector.shape_cast %151 : vector<1x8x1xf32> to vector<8x1xf32>
      %cst_68 = arith.constant dense<0xFF800000> : vector<8xf32>
      %153 = vector.multi_reduction <maximumf>, %146, %cst_68 [1] : vector<8x128xf32> to vector<8xf32>
      %154 = vector.shape_cast %153 : vector<8xf32> to vector<8x1xf32>
      %155 = vector.broadcast %154 : vector<8x1xf32> to vector<8x128xf32>
      %156 = arith.subf %146, %155 : vector<8x128xf32>
      %157 = math.exp %156 : vector<8x128xf32>
      %c0_69 = arith.constant 0 : index
      %c0_70 = arith.constant 0 : index
      %158 = vector.load %arg5[%c0_69, %c0_70] : memref<128x128xf32, #tpu.memory_space<vmem>>, vector<128x128xf32>
      %cst_71 = arith.constant dense<0.000000e+00> : vector<8x128xf32>
      %159 = tpu.matmul %157, %158, %cst_71 {dimension_numbers = #tpu.dot_dimension_numbers<[1], [0], [0], [1], [0, 0, 1, 1], [], []>} : vector<8x128xf32>, vector<128x128xf32>, vector<8x128xf32> -> vector<8x128xf32>
      %160 = vector.broadcast %154 : vector<8x1xf32> to vector<8x128xf32>
      %161 = arith.addf %149, %160 : vector<8x128xf32>
      %c0_72 = arith.constant 0 : index
      %c0_73 = arith.constant 0 : index
      %162 = vector.load %arg6[%c0_72, %c0_73] : memref<1x128xf32, #tpu.memory_space<vmem>>, vector<1x128xf32>
      %163 = vector.broadcast %162 : vector<1x128xf32> to vector<8x128xf32>
      %164 = arith.addf %161, %163 : vector<8x128xf32>
      %cst_74 = arith.constant 9.99999991E-38 : f32
      %165 = vector.broadcast %cst_74 : f32 to vector<8x128xf32>
      %166 = arith.maximumf %159, %165 : vector<8x128xf32>
      %167 = math.log %166 : vector<8x128xf32>
      %168 = arith.addf %164, %167 : vector<8x128xf32>
      %cst_75 = arith.constant 0.000000e+00 : f32
      %169 = vector.broadcast %cst_75 : f32 to vector<8x1xf32>
      %170 = arith.cmpf ogt, %152, %169 : vector<8x1xf32>
      %171 = vector.shape_cast %170 : vector<8x1xi1> to vector<8x1xi1>
      %172 = vector.broadcast %171 : vector<8x1xi1> to vector<8x128xi1>
      %173 = arith.select %172, %168, %146 : vector<8x128xi1>, vector<8x128xf32>
      %c7_i32 = arith.constant 7 : i32
      %174 = arith.index_cast %c7_i32 : i32 to index
      %c0_76 = arith.constant 0 : index
      %c0_77 = arith.constant 0 : index
      %175 = vector.load %arg3[%174, %c0_76, %c0_77] : memref<8x8x128xf32, #tpu.memory_space<vmem>>, vector<1x8x128xf32>
      %176 = vector.shape_cast %175 : vector<1x8x128xf32> to vector<8x128xf32>
      %177 = arith.index_cast %c7_i32 : i32 to index
      %c0_78 = arith.constant 0 : index
      %c0_79 = arith.constant 0 : index
      %178 = vector.load %arg4[%177, %c0_78, %c0_79] : memref<8x8x1xf32, #tpu.memory_space<vmem>>, vector<1x8x1xf32>
      %179 = vector.shape_cast %178 : vector<1x8x1xf32> to vector<8x1xf32>
      %cst_80 = arith.constant dense<0xFF800000> : vector<8xf32>
      %180 = vector.multi_reduction <maximumf>, %173, %cst_80 [1] : vector<8x128xf32> to vector<8xf32>
      %181 = vector.shape_cast %180 : vector<8xf32> to vector<8x1xf32>
      %182 = vector.broadcast %181 : vector<8x1xf32> to vector<8x128xf32>
      %183 = arith.subf %173, %182 : vector<8x128xf32>
      %184 = math.exp %183 : vector<8x128xf32>
      %c0_81 = arith.constant 0 : index
      %c0_82 = arith.constant 0 : index
      %185 = vector.load %arg5[%c0_81, %c0_82] : memref<128x128xf32, #tpu.memory_space<vmem>>, vector<128x128xf32>
      %cst_83 = arith.constant dense<0.000000e+00> : vector<8x128xf32>
      %186 = tpu.matmul %184, %185, %cst_83 {dimension_numbers = #tpu.dot_dimension_numbers<[1], [0], [0], [1], [0, 0, 1, 1], [], []>} : vector<8x128xf32>, vector<128x128xf32>, vector<8x128xf32> -> vector<8x128xf32>
      %187 = vector.broadcast %181 : vector<8x1xf32> to vector<8x128xf32>
      %188 = arith.addf %176, %187 : vector<8x128xf32>
      %c0_84 = arith.constant 0 : index
      %c0_85 = arith.constant 0 : index
      %189 = vector.load %arg6[%c0_84, %c0_85] : memref<1x128xf32, #tpu.memory_space<vmem>>, vector<1x128xf32>
      %190 = vector.broadcast %189 : vector<1x128xf32> to vector<8x128xf32>
      %191 = arith.addf %188, %190 : vector<8x128xf32>
      %cst_86 = arith.constant 9.99999991E-38 : f32
      %192 = vector.broadcast %cst_86 : f32 to vector<8x128xf32>
      %193 = arith.maximumf %186, %192 : vector<8x128xf32>
      %194 = math.log %193 : vector<8x128xf32>
      %195 = arith.addf %191, %194 : vector<8x128xf32>
      %cst_87 = arith.constant 0.000000e+00 : f32
      %196 = vector.broadcast %cst_87 : f32 to vector<8x1xf32>
      %197 = arith.cmpf ogt, %179, %196 : vector<8x1xf32>
      %198 = vector.shape_cast %197 : vector<8x1xi1> to vector<8x1xi1>
      %199 = vector.broadcast %198 : vector<8x1xi1> to vector<8x128xi1>
      %200 = arith.select %199, %195, %173 : vector<8x128xi1>, vector<8x128xf32>
      %c7_i32_88 = arith.constant 7 : i32
      %c0_89 = arith.constant 0 : index
      %c0_90 = arith.constant 0 : index
      %201 = vector.load %arg7[%c0_89, %c0_90] : memref<8x128xf32, #tpu.memory_space<vmem>>, vector<8x128xf32>
      tpu.vector_store %arg7[%c0_89, %c0_90], %200 {strides = array<i32>} : memref<8x128xf32, #tpu.memory_space<vmem>>, vector<8x128xf32>,
    } else {
    }
    %c0_i32_1 = arith.constant 0 : i32
    %3 = arith.cmpi sgt, %arg1, %c0_i32_1 : i32
    %4 = arith.index_cast %arg0 : i32 to index
    %5 = memref.load %arg2[%4] : memref<1xi32, #tpu.memory_space<smem>>
    %6 = arith.cmpi sle, %arg1, %5 : i32
    %7 = arith.andi %3, %6 : i1
    %8 = arith.extui %7 : i1 to i32
    %c0_i32_2 = arith.constant 0 : i32
    %9 = arith.cmpi ne, %8, %c0_i32_2 : i32
    scf.if %9 {
      %c0 = arith.constant 0 : index
      %c0_3 = arith.constant 0 : index
      %10 = vector.load %arg7[%c0, %c0_3] : memref<8x128xf32, #tpu.memory_space<vmem>>, vector<8x128xf32>
      %c0_i32_4 = arith.constant 0 : i32
      %11 = arith.index_cast %c0_i32_4 : i32 to index
      %c0_5 = arith.constant 0 : index
      %c0_6 = arith.constant 0 : index
      %12 = vector.load %arg3[%11, %c0_5, %c0_6] : memref<8x8x128xf32, #tpu.memory_space<vmem>>, vector<1x8x128xf32>
      %13 = vector.shape_cast %12 : vector<1x8x128xf32> to vector<8x128xf32>
      %14 = arith.index_cast %c0_i32_4 : i32 to index
      %c0_7 = arith.constant 0 : index
      %c0_8 = arith.constant 0 : index
      %15 = vector.load %arg4[%14, %c0_7, %c0_8] : memref<8x8x1xf32, #tpu.memory_space<vmem>>, vector<1x8x1xf32>
      %16 = vector.shape_cast %15 : vector<1x8x1xf32> to vector<8x1xf32>
      %cst = arith.constant dense<0xFF800000> : vector<8xf32>
      %17 = vector.multi_reduction <maximumf>, %10, %cst [1] : vector<8x128xf32> to vector<8xf32>
      %18 = vector.shape_cast %17 : vector<8xf32> to vector<8x1xf32>
      %19 = vector.broadcast %18 : vector<8x1xf32> to vector<8x128xf32>
      %20 = arith.subf %10, %19 : vector<8x128xf32>
      %21 = math.exp %20 : vector<8x128xf32>
      %c0_9 = arith.constant 0 : index
      %c0_10 = arith.constant 0 : index
      %22 = vector.load %arg5[%c0_9, %c0_10] : memref<128x128xf32, #tpu.memory_space<vmem>>, vector<128x128xf32>
      %cst_11 = arith.constant dense<0.000000e+00> : vector<8x128xf32>
      %23 = tpu.matmul %21, %22, %cst_11 {dimension_numbers = #tpu.dot_dimension_numbers<[1], [0], [0], [1], [0, 0, 1, 1], [], []>} : vector<8x128xf32>, vector<128x128xf32>, vector<8x128xf32> -> vector<8x128xf32>
      %24 = vector.broadcast %18 : vector<8x1xf32> to vector<8x128xf32>
      %25 = arith.addf %13, %24 : vector<8x128xf32>
      %c0_12 = arith.constant 0 : index
      %c0_13 = arith.constant 0 : index
      %26 = vector.load %arg6[%c0_12, %c0_13] : memref<1x128xf32, #tpu.memory_space<vmem>>, vector<1x128xf32>
      %27 = vector.broadcast %26 : vector<1x128xf32> to vector<8x128xf32>
      %28 = arith.addf %25, %27 : vector<8x128xf32>
      %cst_14 = arith.constant 9.99999991E-38 : f32
      %29 = vector.broadcast %cst_14 : f32 to vector<8x128xf32>
      %30 = arith.maximumf %23, %29 : vector<8x128xf32>
      %31 = math.log %30 : vector<8x128xf32>
      %32 = arith.addf %28, %31 : vector<8x128xf32>
      %cst_15 = arith.constant 0.000000e+00 : f32
      %33 = vector.broadcast %cst_15 : f32 to vector<8x1xf32>
      %34 = arith.cmpf ogt, %16, %33 : vector<8x1xf32>
      %35 = vector.shape_cast %34 : vector<8x1xi1> to vector<8x1xi1>
      %36 = vector.broadcast %35 : vector<8x1xi1> to vector<8x128xi1>
      %37 = arith.select %36, %32, %10 : vector<8x128xi1>, vector<8x128xf32>
      %c1_i32 = arith.constant 1 : i32
      %38 = arith.index_cast %c1_i32 : i32 to index
      %c0_16 = arith.constant 0 : index
      %c0_17 = arith.constant 0 : index
      %39 = vector.load %arg3[%38, %c0_16, %c0_17] : memref<8x8x128xf32, #tpu.memory_space<vmem>>, vector<1x8x128xf32>
      %40 = vector.shape_cast %39 : vector<1x8x128xf32> to vector<8x128xf32>
      %41 = arith.index_cast %c1_i32 : i32 to index
      %c0_18 = arith.constant 0 : index
      %c0_19 = arith.constant 0 : index
      %42 = vector.load %arg4[%41, %c0_18, %c0_19] : memref<8x8x1xf32, #tpu.memory_space<vmem>>, vector<1x8x1xf32>
      %43 = vector.shape_cast %42 : vector<1x8x1xf32> to vector<8x1xf32>
      %cst_20 = arith.constant dense<0xFF800000> : vector<8xf32>
      %44 = vector.multi_reduction <maximumf>, %37, %cst_20 [1] : vector<8x128xf32> to vector<8xf32>
      %45 = vector.shape_cast %44 : vector<8xf32> to vector<8x1xf32>
      %46 = vector.broadcast %45 : vector<8x1xf32> to vector<8x128xf32>
      %47 = arith.subf %37, %46 : vector<8x128xf32>
      %48 = math.exp %47 : vector<8x128xf32>
      %c0_21 = arith.constant 0 : index
      %c0_22 = arith.constant 0 : index
      %49 = vector.load %arg5[%c0_21, %c0_22] : memref<128x128xf32, #tpu.memory_space<vmem>>, vector<128x128xf32>
      %cst_23 = arith.constant dense<0.000000e+00> : vector<8x128xf32>
      %50 = tpu.matmul %48, %49, %cst_23 {dimension_numbers = #tpu.dot_dimension_numbers<[1], [0], [0], [1], [0, 0, 1, 1], [], []>} : vector<8x128xf32>, vector<128x128xf32>, vector<8x128xf32> -> vector<8x128xf32>
      %51 = vector.broadcast %45 : vector<8x1xf32> to vector<8x128xf32>
      %52 = arith.addf %40, %51 : vector<8x128xf32>
      %c0_24 = arith.constant 0 : index
      %c0_25 = arith.constant 0 : index
      %53 = vector.load %arg6[%c0_24, %c0_25] : memref<1x128xf32, #tpu.memory_space<vmem>>, vector<1x128xf32>
      %54 = vector.broadcast %53 : vector<1x128xf32> to vector<8x128xf32>
      %55 = arith.addf %52, %54 : vector<8x128xf32>
      %cst_26 = arith.constant 9.99999991E-38 : f32
      %56 = vector.broadcast %cst_26 : f32 to vector<8x128xf32>
      %57 = arith.maximumf %50, %56 : vector<8x128xf32>
      %58 = math.log %57 : vector<8x128xf32>
      %59 = arith.addf %55, %58 : vector<8x128xf32>
      %cst_27 = arith.constant 0.000000e+00 : f32
      %60 = vector.broadcast %cst_27 : f32 to vector<8x1xf32>
      %61 = arith.cmpf ogt, %43, %60 : vector<8x1xf32>
      %62 = vector.shape_cast %61 : vector<8x1xi1> to vector<8x1xi1>
      %63 = vector.broadcast %62 : vector<8x1xi1> to vector<8x128xi1>
      %64 = arith.select %63, %59, %37 : vector<8x128xi1>, vector<8x128xf32>
      %c2_i32 = arith.constant 2 : i32
      %65 = arith.index_cast %c2_i32 : i32 to index
      %c0_28 = arith.constant 0 : index
      %c0_29 = arith.constant 0 : index
      %66 = vector.load %arg3[%65, %c0_28, %c0_29] : memref<8x8x128xf32, #tpu.memory_space<vmem>>, vector<1x8x128xf32>
      %67 = vector.shape_cast %66 : vector<1x8x128xf32> to vector<8x128xf32>
      %68 = arith.index_cast %c2_i32 : i32 to index
      %c0_30 = arith.constant 0 : index
      %c0_31 = arith.constant 0 : index
      %69 = vector.load %arg4[%68, %c0_30, %c0_31] : memref<8x8x1xf32, #tpu.memory_space<vmem>>, vector<1x8x1xf32>
      %70 = vector.shape_cast %69 : vector<1x8x1xf32> to vector<8x1xf32>
      %cst_32 = arith.constant dense<0xFF800000> : vector<8xf32>
      %71 = vector.multi_reduction <maximumf>, %64, %cst_32 [1] : vector<8x128xf32> to vector<8xf32>
      %72 = vector.shape_cast %71 : vector<8xf32> to vector<8x1xf32>
      %73 = vector.broadcast %72 : vector<8x1xf32> to vector<8x128xf32>
      %74 = arith.subf %64, %73 : vector<8x128xf32>
      %75 = math.exp %74 : vector<8x128xf32>
      %c0_33 = arith.constant 0 : index
      %c0_34 = arith.constant 0 : index
      %76 = vector.load %arg5[%c0_33, %c0_34] : memref<128x128xf32, #tpu.memory_space<vmem>>, vector<128x128xf32>
      %cst_35 = arith.constant dense<0.000000e+00> : vector<8x128xf32>
      %77 = tpu.matmul %75, %76, %cst_35 {dimension_numbers = #tpu.dot_dimension_numbers<[1], [0], [0], [1], [0, 0, 1, 1], [], []>} : vector<8x128xf32>, vector<128x128xf32>, vector<8x128xf32> -> vector<8x128xf32>
      %78 = vector.broadcast %72 : vector<8x1xf32> to vector<8x128xf32>
      %79 = arith.addf %67, %78 : vector<8x128xf32>
      %c0_36 = arith.constant 0 : index
      %c0_37 = arith.constant 0 : index
      %80 = vector.load %arg6[%c0_36, %c0_37] : memref<1x128xf32, #tpu.memory_space<vmem>>, vector<1x128xf32>
      %81 = vector.broadcast %80 : vector<1x128xf32> to vector<8x128xf32>
      %82 = arith.addf %79, %81 : vector<8x128xf32>
      %cst_38 = arith.constant 9.99999991E-38 : f32
      %83 = vector.broadcast %cst_38 : f32 to vector<8x128xf32>
      %84 = arith.maximumf %77, %83 : vector<8x128xf32>
      %85 = math.log %84 : vector<8x128xf32>
      %86 = arith.addf %82, %85 : vector<8x128xf32>
      %cst_39 = arith.constant 0.000000e+00 : f32
      %87 = vector.broadcast %cst_39 : f32 to vector<8x1xf32>
      %88 = arith.cmpf ogt, %70, %87 : vector<8x1xf32>
      %89 = vector.shape_cast %88 : vector<8x1xi1> to vector<8x1xi1>
      %90 = vector.broadcast %89 : vector<8x1xi1> to vector<8x128xi1>
      %91 = arith.select %90, %86, %64 : vector<8x128xi1>, vector<8x128xf32>
      %c3_i32 = arith.constant 3 : i32
      %92 = arith.index_cast %c3_i32 : i32 to index
      %c0_40 = arith.constant 0 : index
      %c0_41 = arith.constant 0 : index
      %93 = vector.load %arg3[%92, %c0_40, %c0_41] : memref<8x8x128xf32, #tpu.memory_space<vmem>>, vector<1x8x128xf32>
      %94 = vector.shape_cast %93 : vector<1x8x128xf32> to vector<8x128xf32>
      %95 = arith.index_cast %c3_i32 : i32 to index
      %c0_42 = arith.constant 0 : index
      %c0_43 = arith.constant 0 : index
      %96 = vector.load %arg4[%95, %c0_42, %c0_43] : memref<8x8x1xf32, #tpu.memory_space<vmem>>, vector<1x8x1xf32>
      %97 = vector.shape_cast %96 : vector<1x8x1xf32> to vector<8x1xf32>
      %cst_44 = arith.constant dense<0xFF800000> : vector<8xf32>
      %98 = vector.multi_reduction <maximumf>, %91, %cst_44 [1] : vector<8x128xf32> to vector<8xf32>
      %99 = vector.shape_cast %98 : vector<8xf32> to vector<8x1xf32>
      %100 = vector.broadcast %99 : vector<8x1xf32> to vector<8x128xf32>
      %101 = arith.subf %91, %100 : vector<8x128xf32>
      %102 = math.exp %101 : vector<8x128xf32>
      %c0_45 = arith.constant 0 : index
      %c0_46 = arith.constant 0 : index
      %103 = vector.load %arg5[%c0_45, %c0_46] : memref<128x128xf32, #tpu.memory_space<vmem>>, vector<128x128xf32>
      %cst_47 = arith.constant dense<0.000000e+00> : vector<8x128xf32>
      %104 = tpu.matmul %102, %103, %cst_47 {dimension_numbers = #tpu.dot_dimension_numbers<[1], [0], [0], [1], [0, 0, 1, 1], [], []>} : vector<8x128xf32>, vector<128x128xf32>, vector<8x128xf32> -> vector<8x128xf32>
      %105 = vector.broadcast %99 : vector<8x1xf32> to vector<8x128xf32>
      %106 = arith.addf %94, %105 : vector<8x128xf32>
      %c0_48 = arith.constant 0 : index
      %c0_49 = arith.constant 0 : index
      %107 = vector.load %arg6[%c0_48, %c0_49] : memref<1x128xf32, #tpu.memory_space<vmem>>, vector<1x128xf32>
      %108 = vector.broadcast %107 : vector<1x128xf32> to vector<8x128xf32>
      %109 = arith.addf %106, %108 : vector<8x128xf32>
      %cst_50 = arith.constant 9.99999991E-38 : f32
      %110 = vector.broadcast %cst_50 : f32 to vector<8x128xf32>
      %111 = arith.maximumf %104, %110 : vector<8x128xf32>
      %112 = math.log %111 : vector<8x128xf32>
      %113 = arith.addf %109, %112 : vector<8x128xf32>
      %cst_51 = arith.constant 0.000000e+00 : f32
      %114 = vector.broadcast %cst_51 : f32 to vector<8x1xf32>
      %115 = arith.cmpf ogt, %97, %114 : vector<8x1xf32>
      %116 = vector.shape_cast %115 : vector<8x1xi1> to vector<8x1xi1>
      %117 = vector.broadcast %116 : vector<8x1xi1> to vector<8x128xi1>
      %118 = arith.select %117, %113, %91 : vector<8x128xi1>, vector<8x128xf32>
      %c4_i32 = arith.constant 4 : i32
      %119 = arith.index_cast %c4_i32 : i32 to index
      %c0_52 = arith.constant 0 : index
      %c0_53 = arith.constant 0 : index
      %120 = vector.load %arg3[%119, %c0_52, %c0_53] : memref<8x8x128xf32, #tpu.memory_space<vmem>>, vector<1x8x128xf32>
      %121 = vector.shape_cast %120 : vector<1x8x128xf32> to vector<8x128xf32>
      %122 = arith.index_cast %c4_i32 : i32 to index
      %c0_54 = arith.constant 0 : index
      %c0_55 = arith.constant 0 : index
      %123 = vector.load %arg4[%122, %c0_54, %c0_55] : memref<8x8x1xf32, #tpu.memory_space<vmem>>, vector<1x8x1xf32>
      %124 = vector.shape_cast %123 : vector<1x8x1xf32> to vector<8x1xf32>
      %cst_56 = arith.constant dense<0xFF800000> : vector<8xf32>
      %125 = vector.multi_reduction <maximumf>, %118, %cst_56 [1] : vector<8x128xf32> to vector<8xf32>
      %126 = vector.shape_cast %125 : vector<8xf32> to vector<8x1xf32>
      %127 = vector.broadcast %126 : vector<8x1xf32> to vector<8x128xf32>
      %128 = arith.subf %118, %127 : vector<8x128xf32>
      %129 = math.exp %128 : vector<8x128xf32>
      %c0_57 = arith.constant 0 : index
      %c0_58 = arith.constant 0 : index
      %130 = vector.load %arg5[%c0_57, %c0_58] : memref<128x128xf32, #tpu.memory_space<vmem>>, vector<128x128xf32>
      %cst_59 = arith.constant dense<0.000000e+00> : vector<8x128xf32>
      %131 = tpu.matmul %129, %130, %cst_59 {dimension_numbers = #tpu.dot_dimension_numbers<[1], [0], [0], [1], [0, 0, 1, 1], [], []>} : vector<8x128xf32>, vector<128x128xf32>, vector<8x128xf32> -> vector<8x128xf32>
      %132 = vector.broadcast %126 : vector<8x1xf32> to vector<8x128xf32>
      %133 = arith.addf %121, %132 : vector<8x128xf32>
      %c0_60 = arith.constant 0 : index
      %c0_61 = arith.constant 0 : index
      %134 = vector.load %arg6[%c0_60, %c0_61] : memref<1x128xf32, #tpu.memory_space<vmem>>, vector<1x128xf32>
      %135 = vector.broadcast %134 : vector<1x128xf32> to vector<8x128xf32>
      %136 = arith.addf %133, %135 : vector<8x128xf32>
      %cst_62 = arith.constant 9.99999991E-38 : f32
      %137 = vector.broadcast %cst_62 : f32 to vector<8x128xf32>
      %138 = arith.maximumf %131, %137 : vector<8x128xf32>
      %139 = math.log %138 : vector<8x128xf32>
      %140 = arith.addf %136, %139 : vector<8x128xf32>
      %cst_63 = arith.constant 0.000000e+00 : f32
      %141 = vector.broadcast %cst_63 : f32 to vector<8x1xf32>
      %142 = arith.cmpf ogt, %124, %141 : vector<8x1xf32>
      %143 = vector.shape_cast %142 : vector<8x1xi1> to vector<8x1xi1>
      %144 = vector.broadcast %143 : vector<8x1xi1> to vector<8x128xi1>
      %145 = arith.select %144, %140, %118 : vector<8x128xi1>, vector<8x128xf32>
      %c5_i32 = arith.constant 5 : i32
      %146 = arith.index_cast %c5_i32 : i32 to index
      %c0_64 = arith.constant 0 : index
      %c0_65 = arith.constant 0 : index
      %147 = vector.load %arg3[%146, %c0_64, %c0_65] : memref<8x8x128xf32, #tpu.memory_space<vmem>>, vector<1x8x128xf32>
      %148 = vector.shape_cast %147 : vector<1x8x128xf32> to vector<8x128xf32>
      %149 = arith.index_cast %c5_i32 : i32 to index
      %c0_66 = arith.constant 0 : index
      %c0_67 = arith.constant 0 : index
      %150 = vector.load %arg4[%149, %c0_66, %c0_67] : memref<8x8x1xf32, #tpu.memory_space<vmem>>, vector<1x8x1xf32>
      %151 = vector.shape_cast %150 : vector<1x8x1xf32> to vector<8x1xf32>
      %cst_68 = arith.constant dense<0xFF800000> : vector<8xf32>
      %152 = vector.multi_reduction <maximumf>, %145, %cst_68 [1] : vector<8x128xf32> to vector<8xf32>
      %153 = vector.shape_cast %152 : vector<8xf32> to vector<8x1xf32>
      %154 = vector.broadcast %153 : vector<8x1xf32> to vector<8x128xf32>
      %155 = arith.subf %145, %154 : vector<8x128xf32>
      %156 = math.exp %155 : vector<8x128xf32>
      %c0_69 = arith.constant 0 : index
      %c0_70 = arith.constant 0 : index
      %157 = vector.load %arg5[%c0_69, %c0_70] : memref<128x128xf32, #tpu.memory_space<vmem>>, vector<128x128xf32>
      %cst_71 = arith.constant dense<0.000000e+00> : vector<8x128xf32>
      %158 = tpu.matmul %156, %157, %cst_71 {dimension_numbers = #tpu.dot_dimension_numbers<[1], [0], [0], [1], [0, 0, 1, 1], [], []>} : vector<8x128xf32>, vector<128x128xf32>, vector<8x128xf32> -> vector<8x128xf32>
      %159 = vector.broadcast %153 : vector<8x1xf32> to vector<8x128xf32>
      %160 = arith.addf %148, %159 : vector<8x128xf32>
      %c0_72 = arith.constant 0 : index
      %c0_73 = arith.constant 0 : index
      %161 = vector.load %arg6[%c0_72, %c0_73] : memref<1x128xf32, #tpu.memory_space<vmem>>, vector<1x128xf32>
      %162 = vector.broadcast %161 : vector<1x128xf32> to vector<8x128xf32>
      %163 = arith.addf %160, %162 : vector<8x128xf32>
      %cst_74 = arith.constant 9.99999991E-38 : f32
      %164 = vector.broadcast %cst_74 : f32 to vector<8x128xf32>
      %165 = arith.maximumf %158, %164 : vector<8x128xf32>
      %166 = math.log %165 : vector<8x128xf32>
      %167 = arith.addf %163, %166 : vector<8x128xf32>
      %cst_75 = arith.constant 0.000000e+00 : f32
      %168 = vector.broadcast %cst_75 : f32 to vector<8x1xf32>
      %169 = arith.cmpf ogt, %151, %168 : vector<8x1xf32>
      %170 = vector.shape_cast %169 : vector<8x1xi1> to vector<8x1xi1>
      %171 = vector.broadcast %170 : vector<8x1xi1> to vector<8x128xi1>
      %172 = arith.select %171, %167, %145 : vector<8x128xi1>, vector<8x128xf32>
      %c6_i32 = arith.constant 6 : i32
      %173 = arith.index_cast %c6_i32 : i32 to index
      %c0_76 = arith.constant 0 : index
      %c0_77 = arith.constant 0 : index
      %174 = vector.load %arg3[%173, %c0_76, %c0_77] : memref<8x8x128xf32, #tpu.memory_space<vmem>>, vector<1x8x128xf32>
      %175 = vector.shape_cast %174 : vector<1x8x128xf32> to vector<8x128xf32>
      %176 = arith.index_cast %c6_i32 : i32 to index
      %c0_78 = arith.constant 0 : index
      %c0_79 = arith.constant 0 : index
      %177 = vector.load %arg4[%176, %c0_78, %c0_79] : memref<8x8x1xf32, #tpu.memory_space<vmem>>, vector<1x8x1xf32>
      %178 = vector.shape_cast %177 : vector<1x8x1xf32> to vector<8x1xf32>
      %cst_80 = arith.constant dense<0xFF800000> : vector<8xf32>
      %179 = vector.multi_reduction <maximumf>, %172, %cst_80 [1] : vector<8x128xf32> to vector<8xf32>
      %180 = vector.shape_cast %179 : vector<8xf32> to vector<8x1xf32>
      %181 = vector.broadcast %180 : vector<8x1xf32> to vector<8x128xf32>
      %182 = arith.subf %172, %181 : vector<8x128xf32>
      %183 = math.exp %182 : vector<8x128xf32>
      %c0_81 = arith.constant 0 : index
      %c0_82 = arith.constant 0 : index
      %184 = vector.load %arg5[%c0_81, %c0_82] : memref<128x128xf32, #tpu.memory_space<vmem>>, vector<128x128xf32>
      %cst_83 = arith.constant dense<0.000000e+00> : vector<8x128xf32>
      %185 = tpu.matmul %183, %184, %cst_83 {dimension_numbers = #tpu.dot_dimension_numbers<[1], [0], [0], [1], [0, 0, 1, 1], [], []>} : vector<8x128xf32>, vector<128x128xf32>, vector<8x128xf32> -> vector<8x128xf32>
      %186 = vector.broadcast %180 : vector<8x1xf32> to vector<8x128xf32>
      %187 = arith.addf %175, %186 : vector<8x128xf32>
      %c0_84 = arith.constant 0 : index
      %c0_85 = arith.constant 0 : index
      %188 = vector.load %arg6[%c0_84, %c0_85] : memref<1x128xf32, #tpu.memory_space<vmem>>, vector<1x128xf32>
      %189 = vector.broadcast %188 : vector<1x128xf32> to vector<8x128xf32>
      %190 = arith.addf %187, %189 : vector<8x128xf32>
      %cst_86 = arith.constant 9.99999991E-38 : f32
      %191 = vector.broadcast %cst_86 : f32 to vector<8x128xf32>
      %192 = arith.maximumf %185, %191 : vector<8x128xf32>
      %193 = math.log %192 : vector<8x128xf32>
      %194 = arith.addf %190, %193 : vector<8x128xf32>
      %cst_87 = arith.constant 0.000000e+00 : f32
      %195 = vector.broadcast %cst_87 : f32 to vector<8x1xf32>
      %196 = arith.cmpf ogt, %178, %195 : vector<8x1xf32>
      %197 = vector.shape_cast %196 : vector<8x1xi1> to vector<8x1xi1>
      %198 = vector.broadcast %197 : vector<8x1xi1> to vector<8x128xi1>
      %199 = arith.select %198, %194, %172 : vector<8x128xi1>, vector<8x128xf32>
      %c7_i32 = arith.constant 7 : i32
      %200 = arith.index_cast %c7_i32 : i32 to index
      %c0_88 = arith.constant 0 : index
      %c0_89 = arith.constant 0 : index
      %201 = vector.load %arg3[%200, %c0_88, %c0_89] : memref<8x8x128xf32, #tpu.memory_space<vmem>>, vector<1x8x128xf32>
      %202 = vector.shape_cast %201 : vector<1x8x128xf32> to vector<8x128xf32>
      %203 = arith.index_cast %c7_i32 : i32 to index
      %c0_90 = arith.constant 0 : index
      %c0_91 = arith.constant 0 : index
      %204 = vector.load %arg4[%203, %c0_90, %c0_91] : memref<8x8x1xf32, #tpu.memory_space<vmem>>, vector<1x8x1xf32>
      %205 = vector.shape_cast %204 : vector<1x8x1xf32> to vector<8x1xf32>
      %cst_92 = arith.constant dense<0xFF800000> : vector<8xf32>
      %206 = vector.multi_reduction <maximumf>, %199, %cst_92 [1] : vector<8x128xf32> to vector<8xf32>
      %207 = vector.shape_cast %206 : vector<8xf32> to vector<8x1xf32>
      %208 = vector.broadcast %207 : vector<8x1xf32> to vector<8x128xf32>
      %209 = arith.subf %199, %208 : vector<8x128xf32>
      %210 = math.exp %209 : vector<8x128xf32>
      %c0_93 = arith.constant 0 : index
      %c0_94 = arith.constant 0 : index
      %211 = vector.load %arg5[%c0_93, %c0_94] : memref<128x128xf32, #tpu.memory_space<vmem>>, vector<128x128xf32>
      %cst_95 = arith.constant dense<0.000000e+00> : vector<8x128xf32>
      %212 = tpu.matmul %210, %211, %cst_95 {dimension_numbers = #tpu.dot_dimension_numbers<[1], [0], [0], [1], [0, 0, 1, 1], [], []>} : vector<8x128xf32>, vector<128x128xf32>, vector<8x128xf32> -> vector<8x128xf32>
      %213 = vector.broadcast %207 : vector<8x1xf32> to vector<8x128xf32>
      %214 = arith.addf %202, %213 : vector<8x128xf32>
      %c0_96 = arith.constant 0 : index
      %c0_97 = arith.constant 0 : index
      %215 = vector.load %arg6[%c0_96, %c0_97] : memref<1x128xf32, #tpu.memory_space<vmem>>, vector<1x128xf32>
      %216 = vector.broadcast %215 : vector<1x128xf32> to vector<8x128xf32>
      %217 = arith.addf %214, %216 : vector<8x128xf32>
      %cst_98 = arith.constant 9.99999991E-38 : f32
      %218 = vector.broadcast %cst_98 : f32 to vector<8x128xf32>
      %219 = arith.maximumf %212, %218 : vector<8x128xf32>
      %220 = math.log %219 : vector<8x128xf32>
      %221 = arith.addf %217, %220 : vector<8x128xf32>
      %cst_99 = arith.constant 0.000000e+00 : f32
      %222 = vector.broadcast %cst_99 : f32 to vector<8x1xf32>
      %223 = arith.cmpf ogt, %205, %222 : vector<8x1xf32>
      %224 = vector.shape_cast %223 : vector<8x1xi1> to vector<8x1xi1>
      %225 = vector.broadcast %224 : vector<8x1xi1> to vector<8x128xi1>
      %226 = arith.select %225, %221, %199 : vector<8x128xi1>, vector<8x128xf32>
      %c8_i32 = arith.constant 8 : i32
      %c0_100 = arith.constant 0 : index
      %c0_101 = arith.constant 0 : index
      %227 = vector.load %arg7[%c0_100, %c0_101] : memref<8x128xf32, #tpu.memory_space<vmem>>, vector<8x128xf32>
      tpu.vector_store %arg7[%c0_100, %c0_101], %226 {strides = array<i32>} : memref<8x128xf32, #tpu.memory_space<vmem>>, vector<8x128xf32>,
    } else {
    }
    return
  }
  func.func @transform_0(%arg0: i32, %arg1: i32, %arg2: memref<1xi32, #tpu.memory_space<smem>>) -> (i32, i32, i32) {
    %0 = arith.index_cast %arg0 : i32 to index
    %1 = memref.load %arg2[%0] : memref<1xi32, #tpu.memory_space<smem>>
    %2 = arith.minsi %arg1, %1 : i32
    %c0_i32 = arith.constant 0 : i32
    %c0_i32_0 = arith.constant 0 : i32
    return %2, %arg0, %c0_i32 : i32, i32, i32
  }
  func.func @transform_1(%arg0: i32, %arg1: i32, %arg2: memref<1xi32, #tpu.memory_space<smem>>) -> (i32, i32, i32) {
    %0 = arith.index_cast %arg0 : i32 to index
    %1 = memref.load %arg2[%0] : memref<1xi32, #tpu.memory_space<smem>>
    %2 = arith.minsi %arg1, %1 : i32
    %c0_i32 = arith.constant 0 : i32
    %c0_i32_0 = arith.constant 0 : i32
    return %2, %arg0, %c0_i32 : i32, i32, i32
  }
  func.func @transform_2(%arg0: i32, %arg1: i32, %arg2: memref<1xi32, #tpu.memory_space<smem>>) -> (i32, i32) {
    %c0_i32 = arith.constant 0 : i32
    %c0_i32_0 = arith.constant 0 : i32
    %c0_i32_1 = arith.constant 0 : i32
    return %c0_i32, %c0_i32_0 : i32, i32
  }
  func.func @transform_3(%arg0: i32, %arg1: i32, %arg2: memref<1xi32, #tpu.memory_space<smem>>) -> (i32, i32) {
    %c0_i32 = arith.constant 0 : i32
    %c0_i32_0 = arith.constant 0 : i32
    %c0_i32_1 = arith.constant 0 : i32
    return %c0_i32, %c0_i32_0 : i32, i32
  }
  func.func @transform_4(%arg0: i32, %arg1: i32, %arg2: memref<1xi32, #tpu.memory_space<smem>>) -> (i32, i32) {
    %c0_i32 = arith.constant 0 : i32
    %c0_i32_0 = arith.constant 0 : i32
    return %arg0, %c0_i32 : i32, i32
  }
}

</mosaic_0001>

<bundles_post_ra>
// kernel: crf_forward.1
= control target key start
LH: loop header
LB: loop body
LE: loop exit
PB: predicated region body
PF: predicated region fallthrough
CT: control target
= control target key end

     0   :  { %v850_v18 = vmov 0   ;;  %s1141_s0 = inlined_call_operand.<no memory space> [shape: s32[1], index: 0, kind: input, shape index: {}]   ;;  %s1142_s3 = inlined_call_operand.vmem [shape: f32[128,128], index: 3, kind: input, shape index: {}]   ;;  %s1143_s4 = inlined_call_operand.vmem [shape: f32[1,128], index: 4, kind: input, shape index: {}]   ;;  %s1144_s1 = inlined_call_operand.vmem [shape: f32[8,8,128], index: 1, kind: input, shape index: {}]   ;;  %s1145_s2 = inlined_call_operand.vmem [shape: f32[8,8,1], index: 2, kind: input, shape index: {}]   ;;  %s1146_s5 = inlined_call_operand.vmem [shape: f32[8,128], index: 5, kind: output, shape index: {}]  }
   0x1   :  { %p782_p0 = scmp.gt.s32.totalorder %s1141_s0, 0  ;;  %v887_v0 = vld [vmem:[%s1142_s3 + $0x78] sm:$0xff]  ;;  %v892_v1 = vld [vmem:[%s1142_s3 + $0x70] sm:$0xff]  ;;  %v902_v2 = vld [vmem:[%s1142_s3 + $0x68] sm:$0xff]  ;;  %818 = vset.pattern.permute.xlu0 %v850_v18  ;;  %819 = vset.pattern.permute.xlu1 %v850_v18 }
   0x2   :  { %113 = vmatpush.msra.mxu0 %v887_v0  ;;  %159 = vmatpush.msra.mxu1 %v887_v0  ;;  %v911_v3 = vld [vmem:[%s1142_s3 + $0x60] sm:$0xff]  ;;  %v920_v4 = vld [vmem:[%s1142_s3 + $0x58] sm:$0xff]  ;;  %v931_v5 = vld [vmem:[%s1142_s3 + $0x50] sm:$0xff] }
   0x3   :  { %s1148_s0 = smov (%p782_p0, %s1141_s0), 0  ;;  %201 = vmatpush.msra.mxu2 %v887_v0  ;;  %243 = vmatpush.msra.mxu3 %v887_v0  ;;  %v948_v6 = vld [vmem:[%s1142_s3 + $0x48] sm:$0xff]  ;;  %v961_v8 = vld [vmem:[%s1142_s3 + $0x40] sm:$0xff]  ;;  %v969_v9 = vld [vmem:[%s1142_s3 + $0x38] sm:$0xff] }
   0x4   :  { %114 = vmatpush.msra.mxu0 %v892_v1  ;;  %160 = vmatpush.msra.mxu1 %v892_v1  ;;  %s783_s28 = sshll.u32 %s1148_s0, 3  ;;  %v978_v10 = vld [vmem:[%s1142_s3 + $0x30] sm:$0xff]  ;;  %v994_v11 = vld [vmem:[%s1142_s3 + $0x28] sm:$0xff]  ;;  %v1001_v12 = vld [vmem:[%s1142_s3 + $0x20] sm:$0xff] }
   0x5   :  { %202 = vmatpush.msra.mxu2 %v892_v1  ;;  %244 = vmatpush.msra.mxu3 %v892_v1  ;;  %p63_p1 = scmp.lt.s32.totalorder %s783_s28, 7  ;;  %v1010_v13 = vld [vmem:[%s1142_s3 + $0x18] sm:$0xff]  ;;  %v1018_v14 = vld [vmem:[%s1142_s3 + $0x10] sm:$0xff]  ;;  %v1024_v15 = vld [vmem:[%s1142_s3 + $0x8] sm:$0xff] }
   0x6   :  { %115 = vmatpush.msra.mxu0 %v902_v2  ;;  %161 = vmatpush.msra.mxu1 %v902_v2  ;;  %v1033_v16 = vld [vmem:[%s1142_s3] sm:$0xff] }
   0x7   :  { %203 = vmatpush.msra.mxu2 %v902_v2  ;;  %245 = vmatpush.msra.mxu3 %v902_v2  ;;  %s1150_s28 = smov (!%p63_p1, %s783_s28), 7  ;;  %v1112_v29 = vld [vmem:[%s1143_s4] ss:$0 sm:$0xff] }
   0x8   :  { %116 = vmatpush.msra.mxu0 %v911_v3  ;;  %162 = vmatpush.msra.mxu1 %v911_v3  ;;  %s784_s9 = sshll.u32 %s1150_s28, 3 }
   0x9   :  { %204 = vmatpush.msra.mxu2 %v911_v3  ;;  %246 = vmatpush.msra.mxu3 %v911_v3  ;;  %s943_s12 = scalar_lea.vmem %s1144_s1, %s784_s9  ;;  %s1043_s10 = scalar_lea.vmem %s1145_s2, %s784_s9 }
   0xa   :  { %117 = vmatpush.msra.mxu0 %v920_v4  ;;  %163 = vmatpush.msra.mxu1 %v920_v4  ;;  %v953_v7 = vld [vmem:[%s943_s12] sm:$0xff]  ;;  %v789_v17 = vld [vmem:[%s1043_s10 + $0x8] sm:$0xff]  ;;  %v791_v37 = vld [vmem:[%s1043_s10 + $0x10] sm:$0xff] }
   0xb   :  { %205 = vmatpush.msra.mxu2 %v920_v4  ;;  %247 = vmatpush.msra.mxu3 %v920_v4  ;;  %vm143_vm0 = vcmp.gt.f32.partialorder %v789_v17, 0.0  ;;  %v797_v20 = vld [vmem:[%s1043_s10 + $0x28] sm:$0xff]  ;;  %vm185_vm3 = vcmp.gt.f32.partialorder %v791_v37, 0.0  ;;  %v795_v39 = vld [vmem:[%s1043_s10 + $0x20] sm:$0xff]  ;;  %v790_v47 = vld [vmem:[%s943_s12 + $0x10] sm:$0xff] }
   0xc   :  { %118 = vmatpush.msra.mxu0 %v931_v5  ;;  %164 = vmatpush.msra.mxu1 %v931_v5  ;;  %v144_v19 = vsel %vm143_vm0, 1, %v850_v18  ;;  %vm311_vm1 = vcmp.gt.f32.partialorder %v797_v20, 0.0  ;;  %v788_v28 = vld [vmem:[%s943_s12 + $0x8] sm:$0xff]  ;;  %v186_v38 = vsel %vm185_vm3, 1, %v850_v18  ;;  %vm269_vm4 = vcmp.gt.f32.partialorder %v795_v39, 0.0  ;;  %v793_v55 = vld [vmem:[%s1043_s10 + $0x18] sm:$0xff] }
   0xd   :  { %92 = vmax.xlane.f32.xlu0 %v953_v7  ;;  %206 = vmatpush.msra.mxu2 %v931_v5  ;;  %v312_v21 = vsel %vm311_vm1, 1, %v850_v18  ;;  %v270_v40 = vsel %vm269_vm4, 1, %v850_v18  ;;  %vm227_vm6 = vcmp.gt.f32.partialorder %v793_v55, 0.0  ;;  %v792_v63 = vld [vmem:[%s943_s12 + $0x18] sm:$0xff] }
   0xe   :  { %119 = vmatpush.msra.mxu0 %v948_v6  ;;  %165 = vmatpush.msra.mxu1 %v948_v6  ;;  %v228_v56 = vsel %vm227_vm6, 1, %v850_v18 }
   0xf   :  { %207 = vmatpush.msra.mxu2 %v948_v6  ;;  %248 = vmatpush.msra.mxu3 %v931_v5 }
  0x10   :  { %120 = vmatpush.msra.mxu0 %v961_v8  ;;  %166 = vmatpush.msra.mxu1 %v961_v8 }
  0x11   :  { %208 = vmatpush.msra.mxu2 %v961_v8  ;;  %249 = vmatpush.msra.mxu3 %v948_v6 }
  0x12   :  { %121 = vmatpush.msra.mxu0 %v969_v9  ;;  %167 = vmatpush.msra.mxu1 %v969_v9 }
  0x13   :  { %209 = vmatpush.msra.mxu2 %v969_v9  ;;  %250 = vmatpush.msra.mxu3 %v961_v8 }
  0x14   :  { %122 = vmatpush.msra.mxu0 %v978_v10  ;;  %168 = vmatpush.msra.mxu1 %v978_v10 }
  0x15   :  { %210 = vmatpush.msra.mxu2 %v978_v10  ;;  %251 = vmatpush.msra.mxu3 %v969_v9 }
  0x16   :  { %123 = vmatpush.msra.mxu0 %v994_v11  ;;  %169 = vmatpush.msra.mxu1 %v994_v11 }
  0x17   :  { %252 = vmatpush.msra.mxu3 %v978_v10  ;;  %211 = vmatpush.msra.mxu2 %v994_v11 }
  0x18   :  { %124 = vmatpush.msra.mxu0 %v1001_v12  ;;  %170 = vmatpush.msra.mxu1 %v1001_v12 }
  0x19   :  { %253 = vmatpush.msra.mxu3 %v994_v11  ;;  %212 = vmatpush.msra.mxu2 %v1001_v12 }
  0x1a   :  { %125 = vmatpush.msra.mxu0 %v1010_v13  ;;  %171 = vmatpush.msra.mxu1 %v1010_v13 }
  0x1b   :  { %254 = vmatpush.msra.mxu3 %v1001_v12  ;;  %213 = vmatpush.msra.mxu2 %v1010_v13 }
  0x1c   :  { %126 = vmatpush.msra.mxu0 %v1018_v14  ;;  %172 = vmatpush.msra.mxu1 %v1018_v14 }
  0x1d   :  { %255 = vmatpush.msra.mxu3 %v1010_v13  ;;  %214 = vmatpush.msra.mxu2 %v1018_v14 }
  0x1e   :  { %127 = vmatpush.msra.mxu0 %v1024_v15  ;;  %173 = vmatpush.msra.mxu1 %v1024_v15 }
  0x1f   :  { %256 = vmatpush.msra.mxu3 %v1018_v14  ;;  %215 = vmatpush.msra.mxu2 %v1024_v15 }
  0x20   :  { %128 = vmatpush.msra.mxu0 %v1033_v16  ;;  %174 = vmatpush.msra.mxu1 %v1033_v16 }
  0x21   :  { %257 = vmatpush.msra.mxu3 %v1024_v15  ;;  %216 = vmatpush.msra.mxu2 %v1033_v16 }
  0x22   :  { %820 = vset.pattern.permute.xlu2 %v850_v18  ;;  %285 = vmatpush.msrb.mxu0 %v887_v0 }
  0x23   :  { %258 = vmatpush.msra.mxu3 %v1033_v16  ;;  %146 = vperm.xlu0 %818, %v144_v19  }
  0x24   :  { %327 = vmatpush.msrb.mxu1 %v887_v0  ;;  %286 = vmatpush.msrb.mxu0 %v892_v1 }
  0x25   :  { %369 = vmatpush.msrb.mxu2 %v887_v0 }
  0x26   :  { %328 = vmatpush.msrb.mxu1 %v892_v1  ;;  %287 = vmatpush.msrb.mxu0 %v902_v2 }
  0x27   :  { %370 = vmatpush.msrb.mxu2 %v892_v1 }
  0x28   :  { %329 = vmatpush.msrb.mxu1 %v902_v2  ;;  %288 = vmatpush.msrb.mxu0 %v911_v3 }
  0x29   :  { %371 = vmatpush.msrb.mxu2 %v902_v2 }
  0x2a   :  { %330 = vmatpush.msrb.mxu1 %v911_v3  ;;  %289 = vmatpush.msrb.mxu0 %v920_v4 }
  0x2b   :  { %372 = vmatpush.msrb.mxu2 %v911_v3  ;;  %314 = vperm.xlu0 %818, %v312_v21  }
  0x2c   :  { %331 = vmatpush.msrb.mxu1 %v920_v4  ;;  %290 = vmatpush.msrb.mxu0 %v931_v5 }
  0x2d   :  { %373 = vmatpush.msrb.mxu2 %v920_v4 }
  0x2e   :  { %332 = vmatpush.msrb.mxu1 %v931_v5  ;;  %291 = vmatpush.msrb.mxu0 %v948_v6 }
  0x2f   :  { %374 = vmatpush.msrb.mxu2 %v931_v5 }
  0x30   :  { %333 = vmatpush.msrb.mxu1 %v948_v6  ;;  %292 = vmatpush.msrb.mxu0 %v961_v8 }
  0x31   :  { %375 = vmatpush.msrb.mxu2 %v948_v6 }
  0x32   :  { %334 = vmatpush.msrb.mxu1 %v961_v8  ;;  %293 = vmatpush.msrb.mxu0 %v969_v9 }
  0x33   :  { %376 = vmatpush.msrb.mxu2 %v961_v8 }
  0x34   :  { %335 = vmatpush.msrb.mxu1 %v969_v9  ;;  %294 = vmatpush.msrb.mxu0 %v978_v10 }
  0x35   :  { %377 = vmatpush.msrb.mxu2 %v969_v9 }
  0x36   :  { %336 = vmatpush.msrb.mxu1 %v978_v10  ;;  %295 = vmatpush.msrb.mxu0 %v994_v11 }
  0x37   :  { %378 = vmatpush.msrb.mxu2 %v978_v10 }
  0x38   :  { %337 = vmatpush.msrb.mxu1 %v994_v11  ;;  %296 = vmatpush.msrb.mxu0 %v1001_v12 }
  0x39   :  { %379 = vmatpush.msrb.mxu2 %v994_v11 }
  0x3a   :  { %338 = vmatpush.msrb.mxu1 %v1001_v12  ;;  %297 = vmatpush.msrb.mxu0 %v1010_v13 }
  0x3b   :  { %380 = vmatpush.msrb.mxu2 %v1001_v12 }
  0x3c   :  { %339 = vmatpush.msrb.mxu1 %v1010_v13  ;;  %298 = vmatpush.msrb.mxu0 %v1018_v14 }
  0x3d   :  { %381 = vmatpush.msrb.mxu2 %v1010_v13 }
  0x3e   :  { %340 = vmatpush.msrb.mxu1 %v1018_v14  ;;  %299 = vmatpush.msrb.mxu0 %v1024_v15 }
  0x3f   :  { %382 = vmatpush.msrb.mxu2 %v1018_v14 }
  0x40   :  { %341 = vmatpush.msrb.mxu1 %v1024_v15  ;;  %300 = vmatpush.msrb.mxu0 %v1033_v16 }
  0x41   :  { %383 = vmatpush.msrb.mxu2 %v1024_v15  ;;  %v794_v15 = vld [vmem:[%s943_s12 + $0x20] sm:$0xff] }
  0x42   :  { %342 = vmatpush.msrb.mxu1 %v1033_v16 }
  0x43   :  { %384 = vmatpush.msrb.mxu2 %v1033_v16 }
  0x80   :  { %v93_v22 = vpop.xlane.xlu0 %92 }
  0x81   :  { %v94_v23 = vsub.f32 %v953_v7, %v93_v22  ;;  %v133_v30 = vadd.f32 %v788_v28, %v93_v22 }
  0x83   :  { %v95_v24 = vmul.f32 1.442695, %v94_v23  ;;  %v138_v32 = vadd.f32 %v1112_v29, %v133_v30 }
  0x85   :  { %822 = vpow2.f32 %v95_v24 }
  0x8b   :  { %v823_v25 = vpop.eup %822 }
  0x8c   :  { %129 = vmatmul.f32.vlgmr.msra.gmra.mxu0 %v823_v25 }
  0x95   :  { %v147_v34 = vpop.permute.xlu0 %146 }
  0x96   :  { %vm148_vm2 = vcmp.eq.s32.totalorder %v147_v34, 1 }
  0x9d   :  { %v315_v34 = vpop.permute.xlu0 %314 }
  0x9e   :  { %vm316_vm10 = vcmp.eq.s32.totalorder %v315_v34, 1 }
 0x109   :  { %v130_v26 = vpop.f32.mrf.mxu0 }
 0x10a   :  { %v139_v27 = vmax.f32 %v130_v26, 1e-37 }
 0x10c   :  { %824 = vlog2.f32 %v139_v27 }
 0x112   :  { %v825_v31 = vpop.eup %824 }
 0x113   :  { %v141_v33 = vmul.f32 0.6931472, %v825_v31  ;;  %v796_v31 = vld [vmem:[%s943_s12 + $0x28] sm:$0xff] }
 0x115   :  { %v142_v35 = vadd.f32 %v141_v33, %v138_v32 }
 0x117   :  { %v149_v36 = vsel %vm148_vm2, %v142_v35, %v953_v7  ;;  %v799_v7 = vld [vmem:[%s1043_s10 + $0x30] sm:$0xff] }
 0x118   :  { %154 = vmax.xlane.f32.xlu1 %v149_v36  ;;  %vm353_vm8 = vcmp.gt.f32.partialorder %v799_v7, 0.0 }
 0x119   :  { %v354_v8 = vsel %vm353_vm8, 1, %v850_v18 }
 0x131   :  { %188 = vperm.xlu1 %819, %v186_v38  }
 0x139   :  { %272 = vperm.xlu1 %819, %v270_v40  }
 0x18b   :  { %v155_v41 = vpop.xlane.xlu1 %154 }
 0x18c   :  { %v156_v42 = vsub.f32 %v149_v36, %v155_v41  ;;  %v179_v48 = vadd.f32 %v790_v47, %v155_v41 }
 0x18e   :  { %v157_v43 = vmul.f32 1.442695, %v156_v42  ;;  %v180_v50 = vadd.f32 %v1112_v29, %v179_v48 }
 0x190   :  { %826 = vpow2.f32 %v157_v43 }
 0x196   :  { %v827_v44 = vpop.eup %826 }
 0x197   :  { %175 = vmatmul.f32.vlgmr.msra.gmra.mxu1 %v827_v44 }
 0x1a3   :  { %v189_v52 = vpop.permute.xlu1 %188 }
 0x1a4   :  { %vm190_vm5 = vcmp.eq.s32.totalorder %v189_v52, 1 }
 0x1ab   :  { %v273_v19 = vpop.permute.xlu1 %272 }
 0x1ac   :  { %vm274_vm9 = vcmp.eq.s32.totalorder %v273_v19, 1 }
 0x214   :  { %v176_v45 = vpop.f32.mrf.mxu1 }
 0x215   :  { %v181_v46 = vmax.f32 %v176_v45, 1e-37  ;;  %v798_v45 = vld [vmem:[%s943_s12 + $0x30] sm:$0xff] }
 0x217   :  { %828 = vlog2.f32 %v181_v46 }
 0x21d   :  { %v829_v49 = vpop.eup %828 }
 0x21e   :  { %v183_v51 = vmul.f32 0.6931472, %v829_v49 }
 0x220   :  { %v184_v53 = vadd.f32 %v183_v51, %v180_v50 }
 0x222   :  { %v191_v54 = vsel %vm190_vm5, %v184_v53, %v149_v36  ;;  %v801_v53 = vld [vmem:[%s1043_s10 + $0x38] sm:$0xff] }
 0x223   :  { %196 = vmax.xlane.f32.xlu2 %v191_v54  ;;  %vm395_vm12 = vcmp.gt.f32.partialorder %v801_v53, 0.0 }
 0x23b   :  { %230 = vperm.xlu2 %820, %v228_v56  }
 0x296   :  { %v197_v57 = vpop.xlane.xlu2 %196 }
 0x297   :  { %v198_v58 = vsub.f32 %v191_v54, %v197_v57  ;;  %v221_v0 = vadd.f32 %v792_v63, %v197_v57 }
 0x299   :  { %v199_v59 = vmul.f32 1.442695, %v198_v58  ;;  %v222_v3 = vadd.f32 %v1112_v29, %v221_v0 }
 0x29b   :  { %830 = vpow2.f32 %v199_v59 }
 0x29e   :  { %v231_v1 = vpop.permute.xlu2 %230 }
 0x29f   :  { %vm232_vm7 = vcmp.eq.s32.totalorder %v231_v1, 1 }
 0x2a1   :  { %v831_v60 = vpop.eup %830 }
 0x2a2   :  { %217 = vmatmul.f32.vlgmr.msra.gmra.mxu2 %v831_v60 }
 0x325   :  { %v218_v61 = vpop.f32.mrf.mxu2 }
 0x326   :  { %v223_v62 = vmax.f32 %v218_v61, 1e-37  ;;  %v800_v61 = vld [vmem:[%s943_s12 + $0x38] sm:$0xff] }
 0x328   :  { %832 = vlog2.f32 %v223_v62 }
 0x32e   :  { %v833_v2 = vpop.eup %832 }
 0x32f   :  { %v225_v4 = vmul.f32 0.6931472, %v833_v2 }
 0x331   :  { %v226_v5 = vadd.f32 %v225_v4, %v222_v3 }
 0x333   :  { %v233_v6 = vsel %vm232_vm7, %v226_v5, %v191_v54  ;;  %v396_v54 = vsel %vm395_vm12, 1, %v850_v18 }
 0x334   :  { %238 = vmax.xlane.f32.xlu2 %v233_v6 }
 0x34c   :  { %356 = vperm.xlu2 %820, %v354_v8  }
 0x3a7   :  { %v239_v9 = vpop.xlane.xlu2 %238 }
 0x3a8   :  { %v240_v10 = vsub.f32 %v233_v6, %v239_v9  ;;  %v263_v16 = vadd.f32 %v794_v15, %v239_v9 }
 0x3aa   :  { %v241_v11 = vmul.f32 1.442695, %v240_v10  ;;  %v264_v20 = vadd.f32 %v1112_v29, %v263_v16 }
 0x3ac   :  { %834 = vpow2.f32 %v241_v11 }
 0x3af   :  { %v357_v48 = vpop.permute.xlu2 %356 }
 0x3b0   :  { %vm358_vm11 = vcmp.eq.s32.totalorder %v357_v48, 1 }
 0x3b2   :  { %v835_v12 = vpop.eup %834 }
 0x3b3   :  { %259 = vmatmul.f32.vlgmr.msra.gmra.mxu3 %v835_v12 }
 0x436   :  { %v260_v13 = vpop.f32.mrf.mxu3 }
 0x437   :  { %v265_v14 = vmax.f32 %v260_v13, 1e-37 }
 0x439   :  { %836 = vlog2.f32 %v265_v14 }
 0x43f   :  { %v837_v17 = vpop.eup %836 }
 0x440   :  { %v267_v21 = vmul.f32 0.6931472, %v837_v17 }
 0x442   :  { %v268_v22 = vadd.f32 %v267_v21, %v264_v20 }
 0x444   :  { %v275_v23 = vsel %vm274_vm9, %v268_v22, %v233_v6 }
 0x445   :  { %280 = vmax.xlane.f32.xlu1 %v275_v23 }
 0x4b8   :  { %v281_v24 = vpop.xlane.xlu1 %280 }
 0x4b9   :  { %v282_v25 = vsub.f32 %v275_v23, %v281_v24  ;;  %v305_v32 = vadd.f32 %v796_v31, %v281_v24 }
 0x4bb   :  { %v283_v26 = vmul.f32 1.442695, %v282_v25  ;;  %v306_v35 = vadd.f32 %v1112_v29, %v305_v32 }
 0x4bd   :  { %838 = vpow2.f32 %v283_v26 }
 0x4c3   :  { %v839_v27 = vpop.eup %838 }
 0x4c4   :  { %301 = vmatmul.f32.vlgmr.msrb.gmra.mxu0 %v839_v27 }
 0x541   :  { %v302_v28 = vpop.f32.mrf.mxu0 }
 0x542   :  { %v307_v30 = vmax.f32 %v302_v28, 1e-37 }
 0x544   :  { %840 = vlog2.f32 %v307_v30 }
 0x54a   :  { %v841_v33 = vpop.eup %840 }
 0x54b   :  { %v309_v36 = vmul.f32 0.6931472, %v841_v33 }
 0x54d   :  { %v310_v37 = vadd.f32 %v309_v36, %v306_v35 }
 0x54f   :  { %v317_v38 = vsel %vm316_vm10, %v310_v37, %v275_v23 }
 0x550   :  { %322 = vmax.xlane.f32.xlu0 %v317_v38 }
 0x5c3   :  { %v323_v39 = vpop.xlane.xlu0 %322 }
 0x5c4   :  { %v324_v40 = vsub.f32 %v317_v38, %v323_v39  ;;  %v347_v46 = vadd.f32 %v798_v45, %v323_v39 }
 0x5c6   :  { %v325_v41 = vmul.f32 1.442695, %v324_v40  ;;  %v348_v49 = vadd.f32 %v1112_v29, %v347_v46 }
 0x5c8   :  { %842 = vpow2.f32 %v325_v41 }
 0x5ce   :  { %v843_v42 = vpop.eup %842 }
 0x5cf   :  { %343 = vmatmul.f32.vlgmr.msrb.gmra.mxu1 %v843_v42 }
 0x64c   :  { %v344_v43 = vpop.f32.mrf.mxu1 }
 0x64d   :  { %v349_v44 = vmax.f32 %v344_v43, 1e-37 }
 0x64f   :  { %844 = vlog2.f32 %v349_v44 }
 0x655   :  { %v845_v47 = vpop.eup %844 }
 0x656   :  { %v351_v50 = vmul.f32 0.6931472, %v845_v47 }
 0x658   :  { %v352_v51 = vadd.f32 %v351_v50, %v348_v49 }
 0x65a   :  { %v359_v52 = vsel %vm358_vm11, %v352_v51, %v317_v38 }
 0x65b   :  { %364 = vmax.xlane.f32.xlu1 %v359_v52 }
 0x674   :  { %398 = vperm.xlu1 %819, %v396_v54  }
 0x6ce   :  { %v365_v55 = vpop.xlane.xlu1 %364 }
 0x6cf   :  { %v366_v56 = vsub.f32 %v359_v52, %v365_v55  ;;  %v389_v62 = vadd.f32 %v800_v61, %v365_v55 }
 0x6d1   :  { %v367_v57 = vmul.f32 1.442695, %v366_v56  ;;  %v390_v0 = vadd.f32 %v1112_v29, %v389_v62 }
 0x6d3   :  { %846 = vpow2.f32 %v367_v57 }
 0x6d9   :  { %v847_v58 = vpop.eup %846 }
 0x6da   :  { %385 = vmatmul.f32.vlgmr.msrb.gmra.mxu2 %v847_v58 }
 0x6e6   :  { %v399_v1 = vpop.permute.xlu1 %398 }
 0x6e7   :  { %vm400_vm13 = vcmp.eq.s32.totalorder %v399_v1, 1 }
 0x75d   :  { %v386_v59 = vpop.f32.mrf.mxu2 }
 0x75e   :  { %v391_v60 = vmax.f32 %v386_v59, 1e-37 }
 0x760   :  { %848 = vlog2.f32 %v391_v60 }
 0x766   :  { %v849_v63 = vpop.eup %848 }
 0x767   :  { %v393_v2 = vmul.f32 0.6931472, %v849_v63 }
 0x769   :  { %v394_v3 = vadd.f32 %v393_v2, %v390_v0 }
 0x76b   :  { %v401_v18 = vsel %vm400_vm13, %v394_v3, %v359_v52 }
 0x76c   :  { %402 = vst [vmem:[%s1146_s5] sm:$0xff] %v401_v18 }

</bundles_post_ra>
